<compile_context>
chip_gen: v7x
topology: tpu7x:2x2x1
jax: 0.10.0
libtpu: 0.0.40
codegen_flags: <defaults>
</compile_context>

<pallas_src>
import jax
import jax.numpy as jnp
from jax import lax
from jax.experimental import pallas as pl
from jax.experimental.pallas import tpu as pltpu


def _round_up(n, m):
    return ((n + m - 1) // m) * m


def _vmem_bytes(bt, F, H, P):
    """Conservative (f32-layout) VMEM footprint estimate for one grid step."""
    lane = lambda n: _round_up(max(n, 1), 128)
    sub = lambda n: _round_up(max(n, 1), 8)
    x_blk = sub(bt) * lane(F) * 4          # x tile (lane-padded layout)
    o_blk = sub(P) * lane(bt) * 4          # output tile
    act = 3 * sub(H) * lane(bt) * 4        # h1 / h2 / pre-store f32 intermediates
    w = (sub(H) * lane(F) + sub(H) * lane(H) + sub(P) * lane(H)) * 4
    b = (2 * sub(H) + sub(P)) * lane(1) * 4
    return 2 * (x_blk + o_blk) + 2 * (w + b) + act


def _mlp_kernel(x_ref, w1_ref, b1_ref, w2_ref, b2_ref, w3_ref, b3_ref, oT_ref):
    # x block arrives in its native [bt, F] layout; contract its feature axis
    # directly (W1[H,F] . X[bt,F]^T -> [H, bt]) so the reorientation to
    # batch-on-lanes is in-VMEM work hidden under the x DMA.
    cd = jnp.promote_types(x_ref.dtype, w1_ref.dtype)
    h = lax.dot_general(
        w1_ref[...].astype(cd), x_ref[...].astype(cd),
        dimension_numbers=(((1,), (1,)), ((), ())),
        preferred_element_type=jnp.float32) + b1_ref[...]            # [H, bt]
    h = jnp.tanh(h)                                                   # f32 EUP

    # Hidden layers: tiny [H,H]/[P,H] weights; keep h in f32 (mem-bound kernel,
    # intermediate casts buy nothing — v5e has no bf16 VPU anyway).
    h = jnp.dot(w2_ref[...].astype(jnp.float32), h,
                preferred_element_type=jnp.float32) + b2_ref[...]     # [H, bt]
    h = jnp.tanh(h)
    out = jnp.dot(w3_ref[...].astype(jnp.float32), h,
                  preferred_element_type=jnp.float32) + b3_ref[...]   # [P, bt]
    oT_ref[...] = out.astype(oT_ref.dtype)


def pref_discrim_forward(x, params, *, batch_tile=None,
                         compute_dtype=jnp.bfloat16,
                         min_pallas_batch=1024):
    """Forward pass of PrefDiscrimNet.

    x: [B, input_size] (already-concatenated obs).  params: dict of
    w1,b1,w2,b2,w3,b3 with w* stored as [in, out] (transpose of
    torch.nn.Linear.weight), i.e. reference is x @ w + b.
    """
    B, F = x.shape
    H = params["w1"].shape[1]
    P = params["w3"].shape[1]
    out_dtype = x.dtype

    # Small-batch fast path: a single fused XLA HLO is strictly cheaper than
    # the pallas_call fixed cost + 128-lane padding at the module's native sizes.
    if B < min_pallas_batch:
        h1 = jnp.tanh(x @ params["w1"] + params["b1"])
        h2 = jnp.tanh(h1 @ params["w2"] + params["b2"])
        return (h2 @ params["w3"] + params["b3"]).astype(out_dtype)

    # Weights in [out, in] layout (tiny transposes), cast once to compute_dtype.
    w1T = params["w1"].T.astype(compute_dtype)            # [H, F]
    w2T = params["w2"].T.astype(compute_dtype)            # [H, H]
    w3T = params["w3"].T.astype(compute_dtype)            # [P, H]
    # Biases as [out, 1] columns -> broadcast across batch lanes; kept f32.
    b1 = params["b1"].reshape(H, 1).astype(jnp.float32)
    b2 = params["b2"].reshape(H, 1).astype(jnp.float32)
    b3 = params["b3"].reshape(P, 1).astype(jnp.float32)

    # ---- batch tile selection -------------------------------------------
    if batch_tile is None:
        # Target ~1 MiB of x HBM bytes per grid step.
        batch_tile = (1 << 20) // max(1, F * x.dtype.itemsize)
    bt = max(128, _round_up(batch_tile, 128))
    # v7x: keep >= 2 grid steps (2 TensorCores) when blocks stay reasonably big.
    half = _round_up(-(-B // 2), 128)
    if half >= 512:
        bt = min(bt, half)
    # VMEM guard (v7x: 64 MiB physical / 32 MiB scoped-default VMEM).
    while bt > 512 and _vmem_bytes(bt, F, H, P) > (40 << 20):
        bt = max(512, _round_up(bt // 2, 128))
    if B <= bt:
        bt = B          # single full-array block: no padding, no OOB boundary
    grid = (pl.cdiv(B, bt),)

    vmem_limit = int(min(
        max(int(_vmem_bytes(bt, F, H, P) * 1.25) + (4 << 20), 32 << 20),
        56 << 20))

    const = lambda *shape: pl.BlockSpec(shape, lambda i: tuple(0 for _ in shape))

    outT = pl.pallas_call(
        _mlp_kernel,
        out_shape=jax.ShapeDtypeStruct((P, B), out_dtype),
        grid_spec=pltpu.PrefetchScalarGridSpec(
            num_scalar_prefetch=0,
            grid=grid,
            in_specs=[
                pl.BlockSpec((bt, F), lambda i: (i, 0)),   # x: native [B, F] layout
                const(H, F),   # w1 (VMEM-resident: constant block index)
                const(H, 1),   # b1
                const(H, H),   # w2
                const(H, 1),   # b2
                const(P, H),   # w3
                const(P, 1),   # b3
            ],
            out_specs=pl.BlockSpec((P, bt), lambda i: (0, i)),
        ),
        compiler_params=pltpu.CompilerParams(
            dimension_semantics=("parallel",),
            vmem_limit_bytes=vmem_limit,
        ),
    )(x, w1T, b1, w2T, b2, w3T, b3)

    # Tiny [P, B] -> [B, P] transpose (B*P elements); keeping the kernel's
    # output stores lane-dense is worth far more than avoiding this.
    return outT.T


def init_params(key, input_size, hidden_dim, pref_dim):
    """Deterministic synthetic init. Weights stored [in, out] (transposed vs torch)."""
    k1, k2, k3, k4, k5, k6 = jax.random.split(key, 6)
    s1 = 1.0 / jnp.sqrt(input_size)
    s2 = 1.0 / jnp.sqrt(hidden_dim)
    return {
        "w1": jax.random.uniform(k1, (input_size, hidden_dim), jnp.float32, -s1, s1),
        "b1": jax.random.uniform(k2, (hidden_dim,), jnp.float32, -s1, s1),
        "w2": jax.random.uniform(k3, (hidden_dim, hidden_dim), jnp.float32, -s2, s2),
        "b2": jax.random.uniform(k4, (hidden_dim,), jnp.float32, -s2, s2),
        "w3": jax.random.uniform(k5, (hidden_dim, pref_dim), jnp.float32, -s2, s2),
        "b3": jax.random.uniform(k6, (pref_dim,), jnp.float32, -s2, s2),
    }


def reference_forward(x, params):
    h1 = jnp.tanh(x @ params["w1"] + params["b1"])
    h2 = jnp.tanh(h1 @ params["w2"] + params["b2"])
    return h2 @ params["w3"] + params["b3"]


if __name__ == "__main__":
    # Small shapes consistent with the module: input_size=32, hidden_dim=32,
    # pref_dim=4, batch=8.
    batch, input_size, hidden_dim, pref_dim = 8, 32, 32, 4

    key = jax.random.PRNGKey(0)
    kx, kp = jax.random.split(key)
    x = jax.random.normal(kx, (batch, input_size), jnp.float32)
    params = init_params(kp, input_size, hidden_dim, pref_dim)
    ref = reference_forward(x, params)

    # 1) f32 weights through the Pallas kernel (forced past the fast path).
    out = jax.block_until_ready(
        pref_discrim_forward(x, params, compute_dtype=jnp.float32,
                             min_pallas_batch=0))
    assert out.shape == (batch, pref_dim)
    assert jnp.allclose(out, ref, atol=2e-2, rtol=2e-2), "f32 mismatch vs reference"

    # 2) Default config (bf16 weights, bf16 x — the HBM-halving path).
    out_bf16 = jax.block_until_ready(
        pref_discrim_forward(x.astype(jnp.bfloat16), params, min_pallas_batch=0))
    assert out_bf16.shape == (batch, pref_dim)
    assert jnp.allclose(out_bf16.astype(jnp.float32), ref, atol=1.5e-1, rtol=1.5e-1), \
        "bf16 mismatch vs reference"

    # 3) Multi-step grid on a ragged batch (exercises cdiv grid + masked
    #    trailing block): B=300, tile=128 -> 3 grid steps, last one partial.
    x2 = jax.random.normal(jax.random.PRNGKey(1), (300, input_size), jnp.float32)
    out2 = jax.block_until_ready(
        pref_discrim_forward(x2, params, batch_tile=128,
                             compute_dtype=jnp.float32, min_pallas_batch=0))
    ref2 = reference_forward(x2, params)
    assert out2.shape == (300, pref_dim)
    assert jnp.allclose(out2, ref2, atol=2e-2, rtol=2e-2), "tiled mismatch vs reference"

    # 4) Default small-batch fast path (skips pallas_call entirely).
    out_fast = jax.block_until_ready(pref_discrim_forward(x, params))
    assert out_fast.shape == (batch, pref_dim)
    assert jnp.allclose(out_fast, ref, atol=1e-5, rtol=1e-5), "fast path mismatch"

    print("KERNEL_OK")
</pallas_src>

<mosaic_0001>
module attributes {stable_mosaic.version = 11 : i64} {
  func.func @_mlp_kernel(%arg0: i32, %arg1: memref<8x32xf32, #tpu.memory_space<vmem>>, %arg2: memref<32x32xf32, #tpu.memory_space<vmem>>, %arg3: memref<32x1xf32, #tpu.memory_space<vmem>>, %arg4: memref<32x32xf32, #tpu.memory_space<vmem>>, %arg5: memref<32x1xf32, #tpu.memory_space<vmem>>, %arg6: memref<4x32xf32, #tpu.memory_space<vmem>>, %arg7: memref<4x1xf32, #tpu.memory_space<vmem>>, %arg8: memref<4x8xf32, #tpu.memory_space<vmem>>) attributes {dimension_semantics = [#tpu.dimension_semantics<parallel>], iteration_bounds = array<i64: 1>, scalar_prefetch = 0 : i64, scratch_operands = 0 : i64, tpu.core_type = #tpu.core_type<tc>, window_params = [{transform_indices = @transform_0, window_bounds = array<i64: 8, 32>}, {pipeline_mode = #tpu.pipeline_mode<synchronous>, transform_indices = @transform_1, window_bounds = array<i64: 32, 32>}, {pipeline_mode = #tpu.pipeline_mode<synchronous>, transform_indices = @transform_2, window_bounds = array<i64: 32, 1>}, {pipeline_mode = #tpu.pipeline_mode<synchronous>, transform_indices = @transform_3, window_bounds = array<i64: 32, 32>}, {pipeline_mode = #tpu.pipeline_mode<synchronous>, transform_indices = @transform_4, window_bounds = array<i64: 32, 1>}, {pipeline_mode = #tpu.pipeline_mode<synchronous>, transform_indices = @transform_5, window_bounds = array<i64: 4, 32>}, {pipeline_mode = #tpu.pipeline_mode<synchronous>, transform_indices = @transform_6, window_bounds = array<i64: 4, 1>}, {transform_indices = @transform_7, window_bounds = array<i64: 4, 8>}]} {
    %c0 = arith.constant 0 : index
    %c0_0 = arith.constant 0 : index
    %0 = vector.load %arg2[%c0, %c0_0] : memref<32x32xf32, #tpu.memory_space<vmem>>, vector<32x32xf32>
    %c0_1 = arith.constant 0 : index
    %c0_2 = arith.constant 0 : index
    %1 = vector.load %arg1[%c0_1, %c0_2] : memref<8x32xf32, #tpu.memory_space<vmem>>, vector<8x32xf32>
    %cst = arith.constant dense<0.000000e+00> : vector<32x8xf32>
    %2 = tpu.matmul %0, %1, %cst {dimension_numbers = #tpu.dot_dimension_numbers<[1], [1], [0], [0], [0, 0, 1, 0], [], []>} : vector<32x32xf32>, vector<8x32xf32>, vector<32x8xf32> -> vector<32x8xf32>
    %c0_3 = arith.constant 0 : index
    %c0_4 = arith.constant 0 : index
    %3 = vector.load %arg3[%c0_3, %c0_4] : memref<32x1xf32, #tpu.memory_space<vmem>>, vector<32x1xf32>
    %4 = vector.broadcast %3 : vector<32x1xf32> to vector<32x8xf32>
    %5 = arith.addf %2, %4 : vector<32x8xf32>
    %6 = math.tanh %5 : vector<32x8xf32>
    %c0_5 = arith.constant 0 : index
    %c0_6 = arith.constant 0 : index
    %7 = vector.load %arg4[%c0_5, %c0_6] : memref<32x32xf32, #tpu.memory_space<vmem>>, vector<32x32xf32>
    %cst_7 = arith.constant dense<0.000000e+00> : vector<32x8xf32>
    %8 = tpu.matmul %7, %6, %cst_7 {dimension_numbers = #tpu.dot_dimension_numbers<[1], [0], [0], [1], [0, 0, 1, 1], [], []>} : vector<32x32xf32>, vector<32x8xf32>, vector<32x8xf32> -> vector<32x8xf32>
    %c0_8 = arith.constant 0 : index
    %c0_9 = arith.constant 0 : index
    %9 = vector.load %arg5[%c0_8, %c0_9] : memref<32x1xf32, #tpu.memory_space<vmem>>, vector<32x1xf32>
    %10 = vector.broadcast %9 : vector<32x1xf32> to vector<32x8xf32>
    %11 = arith.addf %8, %10 : vector<32x8xf32>
    %12 = math.tanh %11 : vector<32x8xf32>
    %c0_10 = arith.constant 0 : index
    %c0_11 = arith.constant 0 : index
    %13 = vector.load %arg6[%c0_10, %c0_11] : memref<4x32xf32, #tpu.memory_space<vmem>>, vector<4x32xf32>
    %cst_12 = arith.constant dense<0.000000e+00> : vector<4x8xf32>
    %14 = tpu.matmul %13, %12, %cst_12 {dimension_numbers = #tpu.dot_dimension_numbers<[1], [0], [0], [1], [0, 0, 1, 1], [], []>} : vector<4x32xf32>, vector<32x8xf32>, vector<4x8xf32> -> vector<4x8xf32>
    %c0_13 = arith.constant 0 : index
    %c0_14 = arith.constant 0 : index
    %15 = vector.load %arg7[%c0_13, %c0_14] : memref<4x1xf32, #tpu.memory_space<vmem>>, vector<4x1xf32>
    %16 = vector.broadcast %15 : vector<4x1xf32> to vector<4x8xf32>
    %17 = arith.addf %14, %16 : vector<4x8xf32>
    %c0_15 = arith.constant 0 : index
    %c0_16 = arith.constant 0 : index
    %18 = vector.load %arg8[%c0_15, %c0_16] : memref<4x8xf32, #tpu.memory_space<vmem>>, vector<4x8xf32>
    tpu.vector_store %arg8[%c0_15, %c0_16], %17 {strides = array<i32>} : memref<4x8xf32, #tpu.memory_space<vmem>>, vector<4x8xf32>,
    return
  }
  func.func @transform_0(%arg0: i32) -> (i32, i32) {
    %c0_i32 = arith.constant 0 : i32
    %c0_i32_0 = arith.constant 0 : i32
    return %arg0, %c0_i32 : i32, i32
  }
  func.func @transform_1(%arg0: i32) -> (i32, i32) {
    %c0_i32 = arith.constant 0 : i32
    %c0_i32_0 = arith.constant 0 : i32
    %c0_i32_1 = arith.constant 0 : i32
    return %c0_i32, %c0_i32_0 : i32, i32
  }
  func.func @transform_2(%arg0: i32) -> (i32, i32) {
    %c0_i32 = arith.constant 0 : i32
    %c0_i32_0 = arith.constant 0 : i32
    %c0_i32_1 = arith.constant 0 : i32
    return %c0_i32, %c0_i32_0 : i32, i32
  }
  func.func @transform_3(%arg0: i32) -> (i32, i32) {
    %c0_i32 = arith.constant 0 : i32
    %c0_i32_0 = arith.constant 0 : i32
    %c0_i32_1 = arith.constant 0 : i32
    return %c0_i32, %c0_i32_0 : i32, i32
  }
  func.func @transform_4(%arg0: i32) -> (i32, i32) {
    %c0_i32 = arith.constant 0 : i32
    %c0_i32_0 = arith.constant 0 : i32
    %c0_i32_1 = arith.constant 0 : i32
    return %c0_i32, %c0_i32_0 : i32, i32
  }
  func.func @transform_5(%arg0: i32) -> (i32, i32) {
    %c0_i32 = arith.constant 0 : i32
    %c0_i32_0 = arith.constant 0 : i32
    %c0_i32_1 = arith.constant 0 : i32
    return %c0_i32, %c0_i32_0 : i32, i32
  }
  func.func @transform_6(%arg0: i32) -> (i32, i32) {
    %c0_i32 = arith.constant 0 : i32
    %c0_i32_0 = arith.constant 0 : i32
    %c0_i32_1 = arith.constant 0 : i32
    return %c0_i32, %c0_i32_0 : i32, i32
  }
  func.func @transform_7(%arg0: i32) -> (i32, i32) {
    %c0_i32 = arith.constant 0 : i32
    %c0_i32_0 = arith.constant 0 : i32
    return %c0_i32, %arg0 : i32, i32
  }
}

</mosaic_0001>

<bundles_post_ra>
// kernel: tpu_custom_call.1
= control target key start
LH: loop header
LB: loop body
LE: loop exit
PB: predicated region body
PF: predicated region fallthrough
CT: control target
= control target key end

     0   :  { %12 = vsyncpa [#allocation3], 0  ;;  %s681_s0 = inlined_call_operand.hbm [shape: f32[8,32], index: 0, kind: input, shape index: {}]   ;;  %s682_s1 = inlined_call_operand.vmem [shape: f32[32,32], index: 1, kind: input, shape index: {}]   ;;  %s683_s2 = inlined_call_operand.vmem [shape: f32[32,1], index: 2, kind: input, shape index: {}]   ;;  %s684_s3 = inlined_call_operand.vmem [shape: f32[32,32], index: 3, kind: input, shape index: {}]   ;;  %s685_s4 = inlined_call_operand.vmem [shape: f32[32,1], index: 4, kind: input, shape index: {}]   ;;  %s686_s5 = inlined_call_operand.vmem [shape: f32[4,32], index: 5, kind: input, shape index: {}]   ;;  %s687_s6 = inlined_call_operand.vmem [shape: f32[4,1], index: 6, kind: input, shape index: {}]   ;;  %s688_s7 = inlined_call_operand.hbm [shape: f32[4,8], index: 7, kind: output, shape index: {}]  }
   0x1   :  { %13 = vsyncpa [#allocation4], 0  ;;  %s546_s24 = smov [#allocation2]   ;;  %s498_s28 = scalar_lea.hbm %s681_s0, 128 }
   0x2   :  { %s20_s25 = sshll.u32 %s546_s24, 4  ;;  %p499_p0 = scmp.ne.s32.totalorder %s681_s0, %s498_s28  ;;  %s21_s25 = int_to_ptr.vmem [resolvable:$true] %s20_s25 }
   0x3   :  { %p502_p1 = scmp.lt.u32.totalorder %s498_s28, %s681_s0 }
   0x5   :  { %p504_p2 = pnand %p502_p1, %p499_p0 }
   0x7   :  { %507 = shalt.err (!%p504_p2)
}
   0x8   :  { %s508_s10 = scalar_lea.vmem %s21_s25, 128  ;;  %p513_p4 = scmp.lt.s32.totalorder %s21_s25, %s21_s25 }
   0x9   :  { %p509_p3 = scmp.ne.s32.totalorder %s21_s25, %s508_s10  ;;  %p514_p5 = scmp.lt.s32.totalorder %s508_s10, %s508_s10 }
   0xb   :  { %p515_p6 = por %p514_p5, %p513_p4 }
   0xd   :  { %p516_p7 = pnand %p515_p6, %p509_p3 }
   0xf   :  { %519 = shalt.err (!%p516_p7)
}
  0x10   :  { %23 = dma.hbm_to_vmem [thread:$0]  %s681_s0, 128, %s21_s25, [#allocation3]  }
  0x11   :  { %542 = dma.done.wait [#allocation3], 128  }
  0x12   :  { %543 = vsyncadd [#allocation3], 4294967168  ;;  %v547_v0 = vmov 0   ;;  %vm68_vm0 = vcmask 261120   ;;  %v43_v1 = vld [vmem:[#allocation2] sm:$0xff]  ;;  %v40_v4 = vld [vmem:[%s682_s1 + $0x8] sm:$0xff] }
  0x13   :  { %480 = vset.pattern.permute.xlu0 %v547_v0  ;;  %481 = vset.pattern.permute.xlu1 %v547_v0  ;;  %v39_v2 = vld [vmem:[%s682_s1] sm:$0xff]  ;;  %v46_v5 = vld [vmem:[%s683_s2 + $0x10] sm:$0xff]  ;;  %v45_v7 = vld [vmem:[%s683_s2 + $0x8] sm:$0xff]  ;;  %v548_v37 = vmov 0.0|0.0   ;;  %vm549_vm1 = vmmov 0   ;;  %v550_v38 = vmov 0.0  }
  0x14   :  { %427 = vmatprep.subr.msk.mxu0 %vm68_vm0, %v43_v1  ;;  %429 = vmatprep.mubr.msk.f32.mxu0 %vm68_vm0, %v39_v2  ;;  %v44_v3 = vld [vmem:[%s683_s2] sm:$0xff]  ;;  %v41_v6 = vld [vmem:[%s682_s1 + $0x10] sm:$0xff]  ;;  %v47_v8 = vld [vmem:[%s683_s2 + $0x18] sm:$0xff]  ;;  %s551_s19 = smov [#allocation5]   ;;  %vm382_vm2 = vcmask 60416  }
  0x15   :  { %428 = vmatpush3.xpose.msk.msra.mxu0 %vm68_vm0, %v43_v1  ;;  %50 = vperm.xlu0 %480, %v44_v3   ;;  %v42_v9 = vld [vmem:[%s682_s1 + $0x18] sm:$0xff]  ;;  %v177_v10 = vld [vmem:[%s685_s4] sm:$0xff]  ;;  %v178_v11 = vld [vmem:[%s685_s4 + $0x8] sm:$0xff]  ;;  %s390_s20 = sshll.u32 %s551_s19, 4  ;;  %s391_s20 = int_to_ptr.vmem [resolvable:$true] %s390_s20 }
  0x16   :  { %60 = vperm.xlu1 %481, %v46_v5   ;;  %v179_v12 = vld [vmem:[%s685_s4 + $0x10] sm:$0xff]  ;;  %v180_v13 = vld [vmem:[%s685_s4 + $0x18] sm:$0xff]  ;;  %v303_v14 = vld [vmem:[%s687_s6] sm:$0xf]  ;;  %468 = vmatprep.subr.bf16.mxu0 %v548_v37  ;;  %s520_s21 = scalar_lea.vmem %s391_s20, 64  ;;  %p525_p9 = scmp.lt.s32.totalorder %s391_s20, %s391_s20 }
  0x17   :  { %v173_v15 = vld [vmem:[%s684_s3] sm:$0xff]  ;;  %v174_v34 = vld [vmem:[%s684_s3 + $0x8] sm:$0xff]  ;;  %v175_v35 = vld [vmem:[%s684_s3 + $0x10] sm:$0xff]  ;;  %p521_p8 = scmp.ne.s32.totalorder %s391_s20, %s520_s21  ;;  %p526_p10 = scmp.lt.s32.totalorder %s520_s21, %s520_s21 }
  0x18   :  { %430 = vmatmul.mubr.msk.f32.vlgmr.msra.gmra.mrb[0].mxu0 %vm68_vm0, %v40_v4  ;;  %443 = vmatprep.mubr.msk.f32.mxu1 %vm68_vm0, %v173_v15  ;;  %v176_v36 = vld [vmem:[%s684_s3 + $0x18] sm:$0xff]  ;;  %v302_v57 = vld [vmem:[%s686_s5] sm:$0xf] }
  0x19   :  { %432 = vmatprep.mubr.msk.f32.mxu0 %vm68_vm0, %v41_v6  ;;  %55 = vperm.xlu0 %480, %v45_v7   ;;  %p527_p11 = por %p526_p10, %p525_p9 }
  0x1a   :  { %65 = vperm.xlu1 %481, %v47_v8  }
  0x1b   :  { %p528_p12 = pnand %p527_p11, %p521_p8 }
  0x1c   :  { %433 = vmatmul.mubr.msk.f32.gmra.mrb[2].mxu0 %vm68_vm0, %v42_v9 }
  0x1d   :  { %183 = vperm.xlu0 %480, %v177_v10   ;;  %457 = vmatprep.mubr.msk.f32.mxu0 %vm549_vm1, %v550_v38 }
  0x1e   :  { %188 = vperm.xlu1 %481, %v178_v11  }
  0x21   :  { %193 = vperm.xlu0 %480, %v179_v12  }
  0x22   :  { %198 = vperm.xlu1 %481, %v180_v13  }
  0x25   :  { %306 = vperm.xlu0 %480, %v303_v14  }
  0x94   :  { %v51_v16 = vpop.permute.xlu0 %50 }
  0x95   :  { %v61_v17 = vpop.permute.xlu1 %60 }
  0x98   :  { %v56_v18 = vpop.permute.xlu0 %55 }
  0x99   :  { %v66_v23 = vpop.permute.xlu1 %65 }
  0x9c   :  { %v184_v40 = vpop.permute.xlu0 %183 }
  0x9d   :  { %v189_v39 = vpop.permute.xlu1 %188 }
  0xa0   :  { %v194_v47 = vpop.permute.xlu0 %193 }
  0xa1   :  { %v199_v45 = vpop.permute.xlu1 %198 }
  0xa4   :  { %v307_v58 = vpop.permute.xlu0 %306 }
  0xeb   :  { %v431_v19 = vpop.f32.mrb[0].mxu0 }
  0xec   :  { %v156_v20 = vadd.f32 %v431_v19, %v56_v18  ;;  %v150_v21 = vpop.f32.mrb[1].mxu0 }
  0xed   :  { %v151_v22 = vadd.f32 %v150_v21, %v51_v16 }
  0xee   :  { %482 = vtanh.f32 %v156_v20 }
  0xef   :  { %484 = vtanh.f32 %v151_v22  ;;  %v434_v24 = vpop.f32.mrb[2].mxu0 }
  0xf0   :  { %v166_v25 = vadd.f32 %v434_v24, %v66_v23  ;;  %v160_v26 = vpop.f32.mrb[3].mxu0 }
  0xf1   :  { %v161_v27 = vadd.f32 %v160_v26, %v61_v17 }
  0xf2   :  { %486 = vtanh.f32 %v166_v25 }
  0xf3   :  { %488 = vtanh.f32 %v161_v27 }
  0xf8   :  { %v483_v28 = vpop.eup %482 }
  0xf9   :  { %v485_v29 = vpop.eup %484 }
  0xfa   :  { %v460_v30 = vpack.c.bf16 %v483_v28, %v485_v29 }
  0xfc   :  { %v487_v31 = vpop.eup %486  ;;  %461 = vmatprep.subr.bf16.mxu1 %v460_v30 }
  0xfd   :  { %v489_v32 = vpop.eup %488  ;;  %463 = vmatpush3.bf16.msra.mxu1 %v460_v30 }
  0xfe   :  { %v464_v33 = vpack.c.bf16 %v487_v31, %v489_v32 }
 0x100   :  { %465 = vmatprep.subr.bf16.mxu1 %v464_v33 }
 0x101   :  { %467 = vmatpush3.bf16.msra.mxu1 %v464_v33 }
 0x104   :  { %444 = vmatmul.mubr.msk.f32.vlgmr.msra.gmra.mrb[0].mxu1 %vm68_vm0, %v174_v34 }
 0x105   :  { %446 = vmatprep.mubr.msk.f32.mxu1 %vm68_vm0, %v175_v35 }
 0x108   :  { %447 = vmatmul.mubr.msk.f32.gmra.mrb[2].mxu1 %vm68_vm0, %v176_v36 }
 0x1d7   :  { %v445_v41 = vpop.f32.mrb[0].mxu1 }
 0x1d8   :  { %v285_v42 = vadd.f32 %v445_v41, %v189_v39  ;;  %v279_v43 = vpop.f32.mrb[1].mxu1 }
 0x1d9   :  { %v280_v44 = vadd.f32 %v279_v43, %v184_v40 }
 0x1da   :  { %490 = vtanh.f32 %v285_v42 }
 0x1db   :  { %492 = vtanh.f32 %v280_v44  ;;  %v448_v46 = vpop.f32.mrb[2].mxu1 }
 0x1dc   :  { %v295_v48 = vadd.f32 %v448_v46, %v199_v45  ;;  %v289_v49 = vpop.f32.mrb[3].mxu1 }
 0x1dd   :  { %v290_v50 = vadd.f32 %v289_v49, %v194_v47 }
 0x1de   :  { %494 = vtanh.f32 %v295_v48 }
 0x1df   :  { %496 = vtanh.f32 %v290_v50 }
 0x1e4   :  { %v491_v51 = vpop.eup %490 }
 0x1e5   :  { %v493_v52 = vpop.eup %492 }
 0x1e6   :  { %v469_v53 = vpack.c.bf16 %v491_v51, %v493_v52 }
 0x1e8   :  { %v495_v54 = vpop.eup %494  ;;  %470 = vmatpush3.bf16.msra.mxu0 %v469_v53 }
 0x1e9   :  { %v497_v55 = vpop.eup %496  ;;  %471 = vmatprep.subr.bf16.mxu0 %v548_v37 }
 0x1ea   :  { %v472_v56 = vpack.c.bf16 %v495_v54, %v497_v55 }
 0x1ec   :  { %473 = vmatpush3.bf16.msra.mxu0 %v472_v56 }
 0x1ef   :  { %458 = vmatmul.mubr.msk.f32.vlgmr.msra.gmra.mrb[4].mxu0 %vm68_vm0, %v302_v57 }
 0x2c2   :  { %v378_v59 = vpop.f32.mrb[4].mxu0 }
 0x2c3   :  { %v379_v60 = vadd.f32 %v378_v59, %v307_v58  ;;  %v459_v61 = vpop.f32.mrb[5].mxu0 }
 0x2c5   :  { %383 = vst.msk [vmem:[#allocation5] sm:$0xf] %vm382_vm2, %v379_v60 }
 0x2c6   :  { %531 = shalt.err (!%p528_p12)
}
 0x2c7   :  { %s532_s23 = scalar_lea.hbm %s688_s7, 64 }
 0x2c8   :  { %p533_p13 = scmp.ne.s32.totalorder %s688_s7, %s532_s23  ;;  %p536_p0 = scmp.lt.u32.totalorder %s532_s23, %s688_s7 }
 0x2ca   :  { %p538_p1 = pnand %p536_p0, %p533_p13 }
 0x2cc   :  { %541 = shalt.err (!%p538_p1)
}
 0x2cd   :  { %393 = dma.vmem_to_hbm [thread:$0]  %s391_s20, 64, %s688_s7, [#allocation4]  }
 0x2ce   :  { %544 = dma.done.wait [#allocation4], 64  }
 0x2cf   :  { %545 = vsyncadd [#allocation4], 4294967232 }
 0x2d0   :  { %397 = vsyncpa [#allocation3], 1 }
 0x2d1   :  { %398 = vsyncpa [#allocation4], 1 }

</bundles_post_ra>
